<compile_context>
chip_gen: v5e
topology: v5e:2x2
jax: 0.10.0
libtpu: 0.0.40
codegen_flags: <defaults>
</compile_context>

<pallas_src>
import jax
import jax.numpy as jnp
from jax.experimental import pallas as pl
from jax.experimental.pallas import tpu as pltpu

LANE = 128  # stage-logit output padded to a full lane width (lane-dense store)


# -----------------------------------------------------------------------------
# Fused kernel: stage path + text path in one pallas_call.
#   stage:  h = xv @ W1 + b1                        (rows_v, 3D)
#           a = relu(h @ Wa_blockdiag + ba)         (rows_v, 3D)
#           stage_pad = a @ Wb_blockdiag_pad + bb   (rows_v, 128)  [cols 0..2 real]
#   text:   t = relu(xt @ Tw1 + tb1)                (rows_t, D)
#           text_logits = t @ Tw2 + tb2             (rows_t, V)
# bf16 MXU operands, f32 accumulation, f32 bias epilogue, f32 stores.
# -----------------------------------------------------------------------------
def _fused_kernel(xv_ref, xt_ref,
                  sw1_ref, sb1_ref, swa_ref, sba_ref, swb_ref, sbb_ref,
                  tw1_ref, tb1_ref, tw2_ref, tb2_ref,
                  stage_ref, text_ref):
    f32 = jnp.float32
    bf16 = jnp.bfloat16

    # ---- stage path (3 branches fused via block-diagonal weights) ----
    xv = xv_ref[...]                                                          # (tv, D) bf16
    h = jnp.dot(xv, sw1_ref[...], preferred_element_type=f32) + sb1_ref[...]  # (tv, 3D) f32
    a = jnp.maximum(
        jnp.dot(h.astype(bf16), swa_ref[...], preferred_element_type=f32) + sba_ref[...],
        0.0)                                                                  # (tv, 3D) f32
    stage_ref[...] = (
        jnp.dot(a.astype(bf16), swb_ref[...], preferred_element_type=f32) + sbb_ref[...]
    ).astype(stage_ref.dtype)                                                 # (tv, 128) lane-dense

    # ---- text path ----
    xt = xt_ref[...]                                                          # (tt, D) bf16
    ht = jnp.maximum(
        jnp.dot(xt, tw1_ref[...], preferred_element_type=f32) + tb1_ref[...],
        0.0)                                                                  # (tt, D) f32
    text_ref[...] = (
        jnp.dot(ht.astype(bf16), tw2_ref[...], preferred_element_type=f32) + tb2_ref[...]
    ).astype(text_ref.dtype)                                                  # (tt, V)


def fused_forward(vid_flat, txt_flat,
                  sw1, sb1, swa, sba, swb, sbb,
                  tw1, tb1, tw2, tb2,
                  *, n_tiles):
    Mv, D = vid_flat.shape
    Mt = txt_flat.shape[0]
    D3 = sw1.shape[1]
    V = tw2.shape[1]
    P = swb.shape[1]            # padded stage-logit width (= LANE)
    tv = Mv // n_tiles
    tt = Mt // n_tiles

    const = lambda i: (0, 0)    # weights / biases: fetched once, never revisited

    return pl.pallas_call(
        _fused_kernel,
        out_shape=(
            jax.ShapeDtypeStruct((Mv, P), jnp.float32),
            jax.ShapeDtypeStruct((Mt, V), jnp.float32),
        ),
        grid=(n_tiles,),
        in_specs=[
            pl.BlockSpec((tv, D), lambda i: (i, 0)),    # vid rows (bf16)
            pl.BlockSpec((tt, D), lambda i: (i, 0)),    # txt rows (bf16)
            pl.BlockSpec((D, D3), const),               # stage W1      (D, 3D)  bf16
            pl.BlockSpec((1, D3), const),               # stage b1      (1, 3D)  f32
            pl.BlockSpec((D3, D3), const),              # stage Wa_bd   (3D, 3D) bf16
            pl.BlockSpec((1, D3), const),               # stage ba      (1, 3D)  f32
            pl.BlockSpec((D3, P), const),               # stage Wb_bd   (3D, 128) bf16
            pl.BlockSpec((1, P), const),                # stage bb      (1, 128) f32
            pl.BlockSpec((D, D), const),                # text W1       bf16
            pl.BlockSpec((1, D), const),                # text b1       f32
            pl.BlockSpec((D, V), const),                # text W2       bf16
            pl.BlockSpec((1, V), const),                # text b2       f32
        ],
        out_specs=(
            pl.BlockSpec((tv, P), lambda i: (i, 0)),    # stage logits (padded, lane-dense)
            pl.BlockSpec((tt, V), lambda i: (i, 0)),    # text logits
        ),
        compiler_params=pltpu.CompilerParams(
            # Only matters when n_tiles > 1 (v7x megacore); harmless at grid=(1,).
            dimension_semantics=("parallel",),
        ),
    )(vid_flat, txt_flat, sw1, sb1, swa, sba, swb, sbb, tw1, tb1, tw2, tb2)


def _choose_n_tiles(rows_v, rows_t, rows_per_tile=256):
    """Single tile unless per-tile work amortizes a grid step.

    v5e/v6e have one TensorCore, so any grid split is a serial loop (pure ~0.35 us/step
    overhead).  On v7x the parallel row-tile axis only pays once each tile carries a few
    microseconds of MXU time, i.e. hundreds of rows.  Tiles must stay 16-row aligned
    (bf16 sublane packing) and split both the video and text row counts evenly.
    """
    n = max(1, rows_v // rows_per_tile)
    while n > 1 and not (rows_v % (n * 16) == 0 and rows_t % (n * 16) == 0):
        n -= 1
    return n


# -----------------------------------------------------------------------------
# Module wrapper (glue in plain JAX)
# -----------------------------------------------------------------------------
class MultiScaleTemporalDetrPallas:
    def __init__(self, d_model, vocab_size, num_query, key):
        self.d_model = d_model
        self.vocab_size = vocab_size
        self.num_query = num_query
        ks = jax.random.split(key, 8)
        scale = 0.02
        D = d_model

        # Block-diagonal stage fusion is only a win within one MXU tile.
        # TODO(synk): for 3*d_model > 128, loop the 3 branch dots over a (3, D, D) ref.
        assert 3 * D <= 128, "fused block-diag stage path assumes 3*d_model <= one MXU tile"

        # stage_mlp1: Linear(D, 3D)
        self.stage_w1 = scale * jax.random.normal(ks[0], (D, 3 * D), jnp.float32)
        self.stage_b1 = jnp.zeros((1, 3 * D), jnp.float32)

        # stage_mlps: 3 x (Linear(D, D) -> ReLU -> Linear(D, 1))  (per-branch master copy)
        self.stage_wa = scale * jax.random.normal(ks[1], (3, D, D), jnp.float32)
        self.stage_ba = 0.01 * jax.random.normal(ks[2], (3, D), jnp.float32)
        self.stage_wb = scale * jax.random.normal(ks[3], (3, D), jnp.float32)
        self.stage_bb = 0.01 * jax.random.normal(ks[4], (3,), jnp.float32)

        # Fused block-diagonal versions used by the kernel.
        swa_bd = jnp.zeros((3 * D, 3 * D), jnp.float32)
        swb_bd = jnp.zeros((3 * D, LANE), jnp.float32)       # padded to 128 lanes
        for i in range(3):
            swa_bd = swa_bd.at[i * D:(i + 1) * D, i * D:(i + 1) * D].set(self.stage_wa[i])
            swb_bd = swb_bd.at[i * D:(i + 1) * D, i].set(self.stage_wb[i])
        self.stage_wa_bd = swa_bd                                    # (3D, 3D)
        self.stage_ba_row = self.stage_ba.reshape(1, 3 * D)          # (1, 3D)
        self.stage_wb_bd = swb_bd                                    # (3D, 128)
        self.stage_bb_row = jnp.zeros((1, LANE), jnp.float32).at[0, :3].set(self.stage_bb)

        # text_mlp: Linear(D, D) -> ReLU -> Linear(D, V)
        self.text_w1 = scale * jax.random.normal(ks[5], (D, D), jnp.float32)
        self.text_b1 = 0.01 * jax.random.normal(ks[6], (1, D), jnp.float32)
        self.text_w2 = scale * jax.random.normal(ks[7], (D, vocab_size), jnp.float32)
        self.text_b2 = jnp.zeros((1, vocab_size), jnp.float32)

        # bf16 copies fed to the MXU (f32 masters kept for reference / training).
        bf16 = jnp.bfloat16
        self.stage_w1_bf = self.stage_w1.astype(bf16)
        self.stage_wa_bd_bf = self.stage_wa_bd.astype(bf16)
        self.stage_wb_bd_bf = self.stage_wb_bd.astype(bf16)
        self.text_w1_bf = self.text_w1.astype(bf16)
        self.text_w2_bf = self.text_w2.astype(bf16)

    def __call__(self, vid_feat, txt_feat, txt_mask):
        B, T, D = vid_feat.shape
        L = txt_feat.shape[1]

        # TODO(synk): frame_pooler is an external injected module -> identity here.
        # TODO(synk): backbone is an external injected module -> single-level identity here
        #             (txt_mask would feed it; unused under the identity stand-in).
        # TODO(synk): head (proposal/score decoder) is an external injected module; not modeled.

        vid_flat = vid_feat.reshape(B * T, D).astype(jnp.bfloat16)
        txt_flat = txt_feat.reshape(B * L, D).astype(jnp.bfloat16)

        n_tiles = _choose_n_tiles(B * T, B * L)

        stage_pad, text_flat_out = fused_forward(
            vid_flat, txt_flat,
            self.stage_w1_bf, self.stage_b1,
            self.stage_wa_bd_bf, self.stage_ba_row,
            self.stage_wb_bd_bf, self.stage_bb_row,
            self.text_w1_bf, self.text_b1, self.text_w2_bf, self.text_b2,
            n_tiles=n_tiles,
        )

        stage_logits = stage_pad[:, :3].reshape(B, T, 3)
        text_logits = text_flat_out.reshape(B, L, self.vocab_size)

        # reference centers (cheap glue)
        reference_centers = jnp.broadcast_to(
            jnp.arange(0, self.num_query, dtype=jnp.float32) / self.num_query,
            (B, self.num_query),
        )

        return dict(
            stage_logits=stage_logits,
            text_logits=text_logits,
            reference_centers=reference_centers,
        )


# -----------------------------------------------------------------------------
# Pure-JAX reference (per-branch, un-fused, full f32 — validates block-diag fusion,
# lane padding and the bf16 cast within loosened tolerance)
# -----------------------------------------------------------------------------
def _reference(model, vid_feat, txt_feat):
    D = model.d_model
    x = vid_feat
    cols = []
    for i in range(3):
        h = x @ model.stage_w1[:, i * D:(i + 1) * D] + model.stage_b1[0, i * D:(i + 1) * D]
        a = jnp.maximum(h @ model.stage_wa[i] + model.stage_ba[i], 0.0)
        l = a @ model.stage_wb[i][:, None] + model.stage_bb[i]
        cols.append(l)
    stage_logits = jnp.concatenate(cols, axis=-1)
    ht = jnp.maximum(txt_feat @ model.text_w1 + model.text_b1[0], 0.0)
    text_logits = ht @ model.text_w2 + model.text_b2[0]
    return stage_logits, text_logits


if __name__ == "__main__":
    B, T, L, D = 2, 16, 8, 32          # batch, num_clips, words, d_model
    vocab_size, num_query = 128, 16

    key = jax.random.PRNGKey(0)
    k_vid, k_txt, k_params = jax.random.split(key, 3)
    vid_feat = jax.random.normal(k_vid, (B, T, D), jnp.float32)
    txt_feat = jax.random.normal(k_txt, (B, L, D), jnp.float32)
    txt_mask = jnp.ones((B, L), jnp.float32)

    model = MultiScaleTemporalDetrPallas(D, vocab_size, num_query, k_params)
    out = model(vid_feat, txt_feat, txt_mask)
    jax.block_until_ready(out)

    ref_stage, ref_text = _reference(model, vid_feat, txt_feat)
    assert out["stage_logits"].shape == (B, T, 3)
    assert out["text_logits"].shape == (B, L, vocab_size)
    assert out["reference_centers"].shape == (B, num_query)
    # bf16 MXU operands (f32 accumulation) vs f32 reference -> loosened tolerance.
    assert jnp.allclose(out["stage_logits"], ref_stage, rtol=5e-2, atol=2e-2)
    assert jnp.allclose(out["text_logits"], ref_text, rtol=5e-2, atol=2e-2)

    print("KERNEL_OK")
</pallas_src>

<mosaic_0001>
module attributes {stable_mosaic.version = 11 : i64} {
  func.func @_fused_kernel(%arg0: i32, %arg1: memref<32x32xbf16, #tpu.memory_space<vmem>>, %arg2: memref<16x32xbf16, #tpu.memory_space<vmem>>, %arg3: memref<32x96xbf16, #tpu.memory_space<vmem>>, %arg4: memref<1x96xf32, #tpu.memory_space<vmem>>, %arg5: memref<96x96xbf16, #tpu.memory_space<vmem>>, %arg6: memref<1x96xf32, #tpu.memory_space<vmem>>, %arg7: memref<96x128xbf16, #tpu.memory_space<vmem>>, %arg8: memref<1x128xf32, #tpu.memory_space<vmem>>, %arg9: memref<32x32xbf16, #tpu.memory_space<vmem>>, %arg10: memref<1x32xf32, #tpu.memory_space<vmem>>, %arg11: memref<32x128xbf16, #tpu.memory_space<vmem>>, %arg12: memref<1x128xf32, #tpu.memory_space<vmem>>, %arg13: memref<32x128xf32, #tpu.memory_space<vmem>>, %arg14: memref<16x128xf32, #tpu.memory_space<vmem>>) attributes {dimension_semantics = [#tpu.dimension_semantics<parallel>], iteration_bounds = array<i64: 1>, scalar_prefetch = 0 : i64, scratch_operands = 0 : i64, tpu.core_type = #tpu.core_type<tc>, window_params = [{transform_indices = @transform_0, window_bounds = array<i64: 32, 32>}, {transform_indices = @transform_1, window_bounds = array<i64: 16, 32>}, {pipeline_mode = #tpu.pipeline_mode<synchronous>, transform_indices = @transform_2, window_bounds = array<i64: 32, 96>}, {pipeline_mode = #tpu.pipeline_mode<synchronous>, transform_indices = @transform_3, window_bounds = array<i64: 1, 96>}, {pipeline_mode = #tpu.pipeline_mode<synchronous>, transform_indices = @transform_4, window_bounds = array<i64: 96, 96>}, {pipeline_mode = #tpu.pipeline_mode<synchronous>, transform_indices = @transform_5, window_bounds = array<i64: 1, 96>}, {pipeline_mode = #tpu.pipeline_mode<synchronous>, transform_indices = @transform_6, window_bounds = array<i64: 96, 128>}, {pipeline_mode = #tpu.pipeline_mode<synchronous>, transform_indices = @transform_7, window_bounds = array<i64: 1, 128>}, {pipeline_mode = #tpu.pipeline_mode<synchronous>, transform_indices = @transform_8, window_bounds = array<i64: 32, 32>}, {pipeline_mode = #tpu.pipeline_mode<synchronous>, transform_indices = @transform_9, window_bounds = array<i64: 1, 32>}, {pipeline_mode = #tpu.pipeline_mode<synchronous>, transform_indices = @transform_10, window_bounds = array<i64: 32, 128>}, {pipeline_mode = #tpu.pipeline_mode<synchronous>, transform_indices = @transform_11, window_bounds = array<i64: 1, 128>}, {transform_indices = @transform_12, window_bounds = array<i64: 32, 128>}, {transform_indices = @transform_13, window_bounds = array<i64: 16, 128>}]} {
    %c0 = arith.constant 0 : index
    %c0_0 = arith.constant 0 : index
    %0 = vector.load %arg1[%c0, %c0_0] : memref<32x32xbf16, #tpu.memory_space<vmem>>, vector<32x32xbf16>
    %c0_1 = arith.constant 0 : index
    %c0_2 = arith.constant 0 : index
    %1 = vector.load %arg3[%c0_1, %c0_2] : memref<32x96xbf16, #tpu.memory_space<vmem>>, vector<32x96xbf16>
    %cst = arith.constant dense<0.000000e+00> : vector<32x96xf32>
    %2 = tpu.matmul %0, %1, %cst {dimension_numbers = #tpu.dot_dimension_numbers<[1], [0], [0], [1], [0, 0, 1, 1], [], []>} : vector<32x32xbf16>, vector<32x96xbf16>, vector<32x96xf32> -> vector<32x96xf32>
    %c0_3 = arith.constant 0 : index
    %c0_4 = arith.constant 0 : index
    %3 = vector.load %arg4[%c0_3, %c0_4] : memref<1x96xf32, #tpu.memory_space<vmem>>, vector<1x96xf32>
    %4 = vector.broadcast %3 : vector<1x96xf32> to vector<32x96xf32>
    %5 = arith.addf %2, %4 : vector<32x96xf32>
    %6 = arith.truncf %5 : vector<32x96xf32> to vector<32x96xbf16>
    %c0_5 = arith.constant 0 : index
    %c0_6 = arith.constant 0 : index
    %7 = vector.load %arg5[%c0_5, %c0_6] : memref<96x96xbf16, #tpu.memory_space<vmem>>, vector<96x96xbf16>
    %cst_7 = arith.constant dense<0.000000e+00> : vector<32x96xf32>
    %8 = tpu.matmul %6, %7, %cst_7 {dimension_numbers = #tpu.dot_dimension_numbers<[1], [0], [0], [1], [0, 0, 1, 1], [], []>} : vector<32x96xbf16>, vector<96x96xbf16>, vector<32x96xf32> -> vector<32x96xf32>
    %c0_8 = arith.constant 0 : index
    %c0_9 = arith.constant 0 : index
    %9 = vector.load %arg6[%c0_8, %c0_9] : memref<1x96xf32, #tpu.memory_space<vmem>>, vector<1x96xf32>
    %10 = vector.broadcast %9 : vector<1x96xf32> to vector<32x96xf32>
    %11 = arith.addf %8, %10 : vector<32x96xf32>
    %cst_10 = arith.constant 0.000000e+00 : f32
    %12 = vector.broadcast %cst_10 : f32 to vector<32x96xf32>
    %13 = arith.maximumf %11, %12 : vector<32x96xf32>
    %14 = arith.truncf %13 : vector<32x96xf32> to vector<32x96xbf16>
    %c0_11 = arith.constant 0 : index
    %c0_12 = arith.constant 0 : index
    %15 = vector.load %arg7[%c0_11, %c0_12] : memref<96x128xbf16, #tpu.memory_space<vmem>>, vector<96x128xbf16>
    %cst_13 = arith.constant dense<0.000000e+00> : vector<32x128xf32>
    %16 = tpu.matmul %14, %15, %cst_13 {dimension_numbers = #tpu.dot_dimension_numbers<[1], [0], [0], [1], [0, 0, 1, 1], [], []>} : vector<32x96xbf16>, vector<96x128xbf16>, vector<32x128xf32> -> vector<32x128xf32>
    %c0_14 = arith.constant 0 : index
    %c0_15 = arith.constant 0 : index
    %17 = vector.load %arg8[%c0_14, %c0_15] : memref<1x128xf32, #tpu.memory_space<vmem>>, vector<1x128xf32>
    %18 = vector.broadcast %17 : vector<1x128xf32> to vector<32x128xf32>
    %19 = arith.addf %16, %18 : vector<32x128xf32>
    %c0_16 = arith.constant 0 : index
    %c0_17 = arith.constant 0 : index
    %20 = vector.load %arg13[%c0_16, %c0_17] : memref<32x128xf32, #tpu.memory_space<vmem>>, vector<32x128xf32>
    tpu.vector_store %arg13[%c0_16, %c0_17], %19 {strides = array<i32>} : memref<32x128xf32, #tpu.memory_space<vmem>>, vector<32x128xf32>,
    %c0_18 = arith.constant 0 : index
    %c0_19 = arith.constant 0 : index
    %21 = vector.load %arg2[%c0_18, %c0_19] : memref<16x32xbf16, #tpu.memory_space<vmem>>, vector<16x32xbf16>
    %c0_20 = arith.constant 0 : index
    %c0_21 = arith.constant 0 : index
    %22 = vector.load %arg9[%c0_20, %c0_21] : memref<32x32xbf16, #tpu.memory_space<vmem>>, vector<32x32xbf16>
    %cst_22 = arith.constant dense<0.000000e+00> : vector<16x32xf32>
    %23 = tpu.matmul %21, %22, %cst_22 {dimension_numbers = #tpu.dot_dimension_numbers<[1], [0], [0], [1], [0, 0, 1, 1], [], []>} : vector<16x32xbf16>, vector<32x32xbf16>, vector<16x32xf32> -> vector<16x32xf32>
    %c0_23 = arith.constant 0 : index
    %c0_24 = arith.constant 0 : index
    %24 = vector.load %arg10[%c0_23, %c0_24] : memref<1x32xf32, #tpu.memory_space<vmem>>, vector<1x32xf32>
    %25 = vector.broadcast %24 : vector<1x32xf32> to vector<16x32xf32>
    %26 = arith.addf %23, %25 : vector<16x32xf32>
    %cst_25 = arith.constant 0.000000e+00 : f32
    %27 = vector.broadcast %cst_25 : f32 to vector<16x32xf32>
    %28 = arith.maximumf %26, %27 : vector<16x32xf32>
    %29 = arith.truncf %28 : vector<16x32xf32> to vector<16x32xbf16>
    %c0_26 = arith.constant 0 : index
    %c0_27 = arith.constant 0 : index
    %30 = vector.load %arg11[%c0_26, %c0_27] : memref<32x128xbf16, #tpu.memory_space<vmem>>, vector<32x128xbf16>
    %cst_28 = arith.constant dense<0.000000e+00> : vector<16x128xf32>
    %31 = tpu.matmul %29, %30, %cst_28 {dimension_numbers = #tpu.dot_dimension_numbers<[1], [0], [0], [1], [0, 0, 1, 1], [], []>} : vector<16x32xbf16>, vector<32x128xbf16>, vector<16x128xf32> -> vector<16x128xf32>
    %c0_29 = arith.constant 0 : index
    %c0_30 = arith.constant 0 : index
    %32 = vector.load %arg12[%c0_29, %c0_30] : memref<1x128xf32, #tpu.memory_space<vmem>>, vector<1x128xf32>
    %33 = vector.broadcast %32 : vector<1x128xf32> to vector<16x128xf32>
    %34 = arith.addf %31, %33 : vector<16x128xf32>
    %c0_31 = arith.constant 0 : index
    %c0_32 = arith.constant 0 : index
    %35 = vector.load %arg14[%c0_31, %c0_32] : memref<16x128xf32, #tpu.memory_space<vmem>>, vector<16x128xf32>
    tpu.vector_store %arg14[%c0_31, %c0_32], %34 {strides = array<i32>} : memref<16x128xf32, #tpu.memory_space<vmem>>, vector<16x128xf32>,
    return
  }
  func.func @transform_0(%arg0: i32) -> (i32, i32) {
    %c0_i32 = arith.constant 0 : i32
    %c0_i32_0 = arith.constant 0 : i32
    return %arg0, %c0_i32 : i32, i32
  }
  func.func @transform_1(%arg0: i32) -> (i32, i32) {
    %c0_i32 = arith.constant 0 : i32
    %c0_i32_0 = arith.constant 0 : i32
    return %arg0, %c0_i32 : i32, i32
  }
  func.func @transform_2(%arg0: i32) -> (i32, i32) {
    %c0_i32 = arith.constant 0 : i32
    %c0_i32_0 = arith.constant 0 : i32
    %c0_i32_1 = arith.constant 0 : i32
    return %c0_i32, %c0_i32_0 : i32, i32
  }
  func.func @transform_3(%arg0: i32) -> (i32, i32) {
    %c0_i32 = arith.constant 0 : i32
    %c0_i32_0 = arith.constant 0 : i32
    %c0_i32_1 = arith.constant 0 : i32
    return %c0_i32, %c0_i32_0 : i32, i32
  }
  func.func @transform_4(%arg0: i32) -> (i32, i32) {
    %c0_i32 = arith.constant 0 : i32
    %c0_i32_0 = arith.constant 0 : i32
    %c0_i32_1 = arith.constant 0 : i32
    return %c0_i32, %c0_i32_0 : i32, i32
  }
  func.func @transform_5(%arg0: i32) -> (i32, i32) {
    %c0_i32 = arith.constant 0 : i32
    %c0_i32_0 = arith.constant 0 : i32
    %c0_i32_1 = arith.constant 0 : i32
    return %c0_i32, %c0_i32_0 : i32, i32
  }
  func.func @transform_6(%arg0: i32) -> (i32, i32) {
    %c0_i32 = arith.constant 0 : i32
    %c0_i32_0 = arith.constant 0 : i32
    %c0_i32_1 = arith.constant 0 : i32
    return %c0_i32, %c0_i32_0 : i32, i32
  }
  func.func @transform_7(%arg0: i32) -> (i32, i32) {
    %c0_i32 = arith.constant 0 : i32
    %c0_i32_0 = arith.constant 0 : i32
    %c0_i32_1 = arith.constant 0 : i32
    return %c0_i32, %c0_i32_0 : i32, i32
  }
  func.func @transform_8(%arg0: i32) -> (i32, i32) {
    %c0_i32 = arith.constant 0 : i32
    %c0_i32_0 = arith.constant 0 : i32
    %c0_i32_1 = arith.constant 0 : i32
    return %c0_i32, %c0_i32_0 : i32, i32
  }
  func.func @transform_9(%arg0: i32) -> (i32, i32) {
    %c0_i32 = arith.constant 0 : i32
    %c0_i32_0 = arith.constant 0 : i32
    %c0_i32_1 = arith.constant 0 : i32
    return %c0_i32, %c0_i32_0 : i32, i32
  }
  func.func @transform_10(%arg0: i32) -> (i32, i32) {
    %c0_i32 = arith.constant 0 : i32
    %c0_i32_0 = arith.constant 0 : i32
    %c0_i32_1 = arith.constant 0 : i32
    return %c0_i32, %c0_i32_0 : i32, i32
  }
  func.func @transform_11(%arg0: i32) -> (i32, i32) {
    %c0_i32 = arith.constant 0 : i32
    %c0_i32_0 = arith.constant 0 : i32
    %c0_i32_1 = arith.constant 0 : i32
    return %c0_i32, %c0_i32_0 : i32, i32
  }
  func.func @transform_12(%arg0: i32) -> (i32, i32) {
    %c0_i32 = arith.constant 0 : i32
    %c0_i32_0 = arith.constant 0 : i32
    return %arg0, %c0_i32 : i32, i32
  }
  func.func @transform_13(%arg0: i32) -> (i32, i32) {
    %c0_i32 = arith.constant 0 : i32
    %c0_i32_0 = arith.constant 0 : i32
    return %arg0, %c0_i32 : i32, i32
  }
}

</mosaic_0001>

<bundles_post_ra>
// kernel: tpu_custom_call.1
= control target key start
LH: loop header
LB: loop body
LE: loop exit
PB: predicated region body
PF: predicated region fallthrough
CT: control target
= control target key end

     0   :  { %19 = vsyncpa [#allocation3], 0  ;;  %s1021_s0 = inlined_call_operand.hbm [shape: bf16[32,32], index: 0, kind: input, shape index: {}]   ;;  %s1022_s1 = inlined_call_operand.hbm [shape: bf16[16,32], index: 1, kind: input, shape index: {}]   ;;  %s1023_s2 = inlined_call_operand.hbm [shape: bf16[32,96], index: 2, kind: input, shape index: {}]   ;;  %s1024_s3 = inlined_call_operand.vmem [shape: f32[1,96], index: 3, kind: input, shape index: {}]   ;;  %s1025_s4 = inlined_call_operand.hbm [shape: bf16[96,96], index: 4, kind: input, shape index: {}]   ;;  %s1026_s5 = inlined_call_operand.vmem [shape: f32[1,96], index: 5, kind: input, shape index: {}]   ;;  %s1027_s6 = inlined_call_operand.hbm [shape: bf16[96,128], index: 6, kind: input, shape index: {}]   ;;  %s1028_s7 = inlined_call_operand.vmem [shape: f32[1,128], index: 7, kind: input, shape index: {}]   ;;  %s1029_s8 = inlined_call_operand.hbm [shape: bf16[32,32], index: 8, kind: input, shape index: {}]   ;;  %s1030_s9 = inlined_call_operand.vmem [shape: f32[1,32], index: 9, kind: input, shape index: {}]   ;;  %s1031_s10 = inlined_call_operand.hbm [shape: bf16[32,128], index: 10, kind: input, shape index: {}]   ;;  %s1032_s11 = inlined_call_operand.vmem [shape: f32[1,128], index: 11, kind: input, shape index: {}]   ;;  %s1033_s12 = inlined_call_operand.hbm [shape: f32[32,128], index: 12, kind: output, shape index: {0}]   ;;  %s1034_s13 = inlined_call_operand.hbm [shape: f32[16,128], index: 13, kind: output, shape index: {1}]  }
   0x1   :  { %20 = vsyncpa [#allocation6], 0 }
   0x2   :  { %21 = vsyncpa [#allocation9], 0 }
   0x3   :  { %22 = vsyncpa [#allocation12], 0 }
   0x4   :  { %23 = vsyncpa [#allocation4], 0 }
   0x5   :  { %24 = vsyncpa [#allocation16], 0  ;;  %s42_s27 = sshll.u32 %s1022_s1, 4  ;;  %s867_s28 = smov [#allocation5]   ;;  %s43_s27 = int_to_ptr.hbm [resolvable:$true] %s42_s27 }
   0x6   :  { %s44_s29 = sshll.u32 %s867_s28, 4  ;;  %s70_s15 = sshll.u32 %s1025_s4, 4  ;;  %s45_s29 = int_to_ptr.vmem [resolvable:$true] %s44_s29  ;;  %s71_s15 = int_to_ptr.hbm [resolvable:$true] %s70_s15 }
   0x7   :  { %s868_s16 = smov 64   ;;  %s869_s17 = smov 4  }
   0x8   :  { %50 = dma.hbm_to_vmem [thread:$0]  %s43_s27, 128, %s45_s29, [#allocation6], %s868_s16, %s868_s16, %s869_s17  }
   0x9   :  { %s870_s18 = smov [#allocation8]   ;;  %s100_s1 = sshll.u32 %s1029_s8, 4  ;;  %s101_s1 = int_to_ptr.hbm [resolvable:$true] %s100_s1 }
   0xa   :  { %s72_s19 = sshll.u32 %s870_s18, 4  ;;  %s29_s23 = sshll.u32 %s1021_s0, 4  ;;  %s73_s19 = int_to_ptr.vmem [resolvable:$true] %s72_s19  ;;  %s30_s23 = int_to_ptr.hbm [resolvable:$true] %s29_s23 }
   0xb   :  { %78 = dma.hbm_to_vmem [thread:$0]  %s71_s15, 768, %s73_s19, [#allocation9], %s868_s16, %s868_s16, %s869_s17  }
   0xc   :  { %s871_s24 = smov [#allocation11]   ;;  %s872_s26 = smov [#allocation2]  }
   0xd   :  { %s102_s25 = sshll.u32 %s871_s24, 4  ;;  %s31_s8 = sshll.u32 %s872_s26, 4  ;;  %s103_s25 = int_to_ptr.vmem [resolvable:$true] %s102_s25  ;;  %s32_s8 = int_to_ptr.vmem [resolvable:$true] %s31_s8 }
   0xe   :  { %108 = dma.hbm_to_vmem [thread:$0]  %s101_s1, 256, %s103_s25, [#allocation12], %s868_s16, %s868_s16, %s869_s17  }
   0xf   :  { %s55_s29 = sshll.u32 %s1023_s2, 4  ;;  %s85_s14 = sshll.u32 %s1027_s6, 4  ;;  %s56_s29 = int_to_ptr.hbm [resolvable:$true] %s55_s29  ;;  %s86_s14 = int_to_ptr.hbm [resolvable:$true] %s85_s14 }
  0x10   :  { %37 = dma.hbm_to_vmem [thread:$0]  %s30_s23, 256, %s32_s8, [#allocation3], %s868_s16, %s868_s16, %s869_s17  }
  0x11   :  { %s873_s15 = smov [#allocation7]   ;;  %s874_s19 = smov [#allocation10]  }
  0x12   :  { %s57_s18 = sshll.u32 %s873_s15, 4  ;;  %s87_s2 = sshll.u32 %s874_s19, 4  ;;  %s58_s18 = int_to_ptr.vmem [resolvable:$true] %s57_s18  ;;  %s88_s2 = int_to_ptr.vmem [resolvable:$true] %s87_s2 }
  0x13   :  { %63 = dma.hbm_to_vmem [thread:$0]  %s56_s29, 256, %s58_s18, [#allocation6], %s868_s16, %s868_s16, %s869_s17  }
  0x14   :  { %s115_s1 = sshll.u32 %s1031_s10, 4  ;;  %s875_s6 = smov [#allocation13]   ;;  %s116_s1 = int_to_ptr.hbm [resolvable:$true] %s115_s1 }
  0x15   :  { %93 = dma.hbm_to_vmem [thread:$0]  %s86_s14, 768, %s88_s2, [#allocation9], %s868_s16, %s868_s16, %s869_s17  }
  0x16   :  { %s117_s4 = sshll.u32 %s875_s6, 4  ;;  %s118_s4 = int_to_ptr.vmem [resolvable:$true] %s117_s4 }
  0x17   :  { %123 = dma.hbm_to_vmem [thread:$0]  %s116_s1, 256, %s118_s4, [#allocation12], %s868_s16, %s868_s16, %s869_s17  }
  0x18   :  { %855 = dma.done.wait [#allocation3], 256  }
  0x19   :  { %856 = vsyncadd [#allocation3], 4294967040 }
  0x1a   :  { %857 = dma.done.wait [#allocation6], 384  }
  0x1b   :  { %858 = vsyncadd [#allocation6], 4294966912 }
  0x1c   :  { %859 = dma.done.wait [#allocation9], 1536  }
  0x1d   :  { %860 = vsyncadd [#allocation9], 4294965760 }
  0x1e   :  { %861 = dma.done.wait [#allocation12], 512  }
  0x1f   :  { %862 = vsyncadd [#allocation12], 4294966784  ;;  %v603_v0 = vld [vmem:[#allocation7 + $0x8] sm:$0xff]  ;;  %v609_v1 = vld [vmem:[#allocation8 + $0x28] sm:$0xff]  ;;  %vm189_vm0 = vcmask 261120   ;;  %vm269_vm1 = vcmask 785408  }
  0x20   :  { %202 = vmatpush.bf16.msra.mxu0 %v603_v0  ;;  %v602_v2 = vld [vmem:[#allocation7] sm:$0xff]  ;;  %v608_v3 = vld [vmem:[#allocation8 + $0x20] sm:$0xff]  ;;  %278 = vmatpush.bf16.msra.mxu1 %v609_v1  ;;  %v600_v4 = vld [vmem:[#allocation2] sm:$0xff]  ;;  %s876_s24 = smov [#allocation15]   ;;  %s487_s27 = sshll.u32 %s1034_s13, 4  ;;  %s488_s27 = int_to_ptr.hbm [resolvable:$true] %s487_s27 }
  0x21   :  { %v607_v5 = vld [vmem:[#allocation8 + $0x18] sm:$0xff]  ;;  %v601_v6 = vld [vmem:[#allocation2 + $0x8] sm:$0xff]  ;;  %v618_v7 = vld [vmem:[#allocation11 + $0x8] sm:$0xff]  ;;  %s485_s25 = sshll.u32 %s876_s24, 4  ;;  %s877_s28 = smov 128   ;;  %s486_s25 = int_to_ptr.vmem [resolvable:$true] %s485_s25 }
  0x22   :  { %418 = vmatpush.bf16.msra.mxu3 %v618_v7  ;;  %v606_v8 = vld [vmem:[#allocation8 + $0x10] sm:$0xff]  ;;  %v617_v9 = vld [vmem:[#allocation11] sm:$0xff]  ;;  %v605_v10 = vld [vmem:[#allocation8 + $0x8] sm:$0xff]  ;;  %s878_s29 = smov 8   ;;  %s474_s18 = sshll.u32 %s1033_s12, 4  ;;  %s475_s18 = int_to_ptr.hbm [resolvable:$true] %s474_s18 }
  0x23   :  { %v616_v11 = vld [vmem:[#allocation5] sm:$0xff]  ;;  %v604_v12 = vld [vmem:[#allocation8] sm:$0xff]  ;;  %v615_v13 = vld [vmem:[#allocation10 + $0x28] sm:$0xff] }
  0x24   :  { %203 = vmatpush.bf16.msra.mxu0 %v602_v2  ;;  %279 = vmatpush.bf16.msra.mxu1 %v608_v3  ;;  %v614_v14 = vld [vmem:[#allocation10 + $0x20] sm:$0xff]  ;;  %v634_v16 = vld [vmem:[%s1024_s3] ss:$0 sm:$0xff]  ;;  %v613_v26 = vld [vmem:[#allocation10 + $0x18] sm:$0xff] }
  0x25   :  { %361 = vmatpush.bf16.msra.mxu2 %v615_v13  ;;  %v612_v28 = vld [vmem:[#allocation10 + $0x10] sm:$0xff]  ;;  %v636_v29 = vld [vmem:[%s1030_s9] ss:$0 sm:$0xff]  ;;  %v610_v36 = vld [vmem:[#allocation10] sm:$0xff] }
  0x26   :  { %419 = vmatpush.bf16.msra.mxu3 %v617_v9  ;;  %v611_v31 = vld [vmem:[#allocation10 + $0x8] sm:$0xff]  ;;  %v619_v37 = vld [vmem:[#allocation13] sm:$0xff] }
  0x27   :  { %524 = vmatmul.msk.bf16.vlgmr.msra.gmra.mxu0 %vm189_vm0, %v600_v4  ;;  %v620_v32 = vld [vmem:[#allocation13 + $0x8] sm:$0xff] }
  0x28   :  { %280 = vmatpush.bf16.msra.mxu1 %v607_v5  ;;  %v635_v41 = vld [vmem:[%s1026_s5] ss:$0 sm:$0xff] }
  0x29   :  { %590 = vmatmul.msk.bf16.vlgmr.msra.gmra.mxu3 %vm189_vm0, %v616_v11  ;;  %362 = vmatpush.bf16.msra.mxu2 %v614_v14  ;;  %v638_v56 = vld [vmem:[%s1032_s11] ss:$0 sm:$0xff]  ;;  %s879_s11 = smov [#allocation14]  }
  0x2a   :  { %458 = vmatpush.bf16.msrb.mxu3 %v620_v32  ;;  %v637_v60 = vld [vmem:[%s1028_s7] ss:$0 sm:$0xff]  ;;  %s472_s13 = sshll.u32 %s879_s11, 4  ;;  %s473_s13 = int_to_ptr.vmem [resolvable:$true] %s472_s13 }
  0x2c   :  { %281 = vmatpush.bf16.msra.mxu1 %v606_v8 }
  0x2d   :  { %363 = vmatpush.bf16.msra.mxu2 %v613_v26 }
  0x2e   :  { %459 = vmatpush.bf16.msrb.mxu3 %v619_v37 }
  0x30   :  { %282 = vmatpush.bf16.msra.mxu1 %v605_v10 }
  0x31   :  { %364 = vmatpush.bf16.msra.mxu2 %v612_v28 }
  0x34   :  { %283 = vmatpush.bf16.msra.mxu1 %v604_v12 }
  0x35   :  { %365 = vmatpush.bf16.msra.mxu2 %v611_v31 }
  0x37   :  { %525 = vmatmul.msk.bf16.gmra.mxu0 %vm189_vm0, %v601_v6 }
  0x39   :  { %366 = vmatpush.bf16.msra.mxu2 %v610_v36 }
  0xa4   :  { %v205_v15 = vpop.f32.mrf.mxu0 }
  0xa5   :  { %v206_v18 = vadd.f32 %v634_v16, %v205_v15 }
  0xac   :  { %v207_v17 = vpop.f32.mrf.mxu0  ;;  %v421_v27 = vpop.f32.mrf.mxu3 }
  0xad   :  { %v208_v19 = vadd.f32 %v634_v16, %v207_v17  ;;  %v422_v30 = vadd.f32 %v636_v29, %v421_v27 }
  0xaf   :  { %v215_v20 = vpack.c.bf16 %v208_v19, %v206_v18  ;;  %v426_v34 = vmax.f32 %v422_v30, 0.0 }
  0xb1   :  { %550 = vmatmul.msk.bf16.vlgmr.msra.gmra.mxu1 %vm269_vm1, %v215_v20 }
  0xb4   :  { %v210_v21 = vpop.f32.mrf.mxu0  ;;  %v423_v33 = vpop.f32.mrf.mxu3 }
  0xb5   :  { %v211_v23 = vadd.f32 %v634_v16, %v210_v21  ;;  %v424_v35 = vadd.f32 %v636_v29, %v423_v33 }
  0xb7   :  { %v427_v38 = vmax.f32 %v424_v35, 0.0 }
  0xb9   :  { %v428_v39 = vpack.c.bf16 %v427_v38, %v426_v34 }
  0xbb   :  { %599 = vmatmul.msk.bf16.vlgmr.msrb.gmra.mxu3 %vm189_vm0, %v428_v39 }
  0xbc   :  { %v212_v22 = vpop.f32.mrf.mxu0 }
  0xbd   :  { %v213_v24 = vadd.f32 %v634_v16, %v212_v22 }
  0xbf   :  { %v216_v25 = vpack.c.bf16 %v213_v24, %v211_v23 }
  0xc1   :  { %551 = vmatmul.msk.bf16.gmra.mxu1 %vm269_vm1, %v216_v25 }
 0x12e   :  { %v285_v40 = vpop.f32.mrf.mxu1 }
 0x12f   :  { %v286_v42 = vadd.f32 %v635_v41, %v285_v40 }
 0x131   :  { %v295_v45 = vmax.f32 %v286_v42, 0.0 }
 0x136   :  { %v287_v43 = vpop.f32.mrf.mxu1 }
 0x137   :  { %v288_v44 = vadd.f32 %v635_v41, %v287_v43 }
 0x139   :  { %v296_v46 = vmax.f32 %v288_v44, 0.0 }
 0x13b   :  { %v299_v47 = vpack.c.bf16 %v296_v46, %v295_v45 }
 0x13d   :  { %576 = vmatmul.msk.bf16.vlgmr.msra.gmra.mxu2 %vm269_vm1, %v299_v47 }
 0x13e   :  { %v290_v48 = vpop.f32.mrf.mxu1  ;;  %v461_v55 = vpop.f32.mrf.mxu3 }
 0x13f   :  { %v291_v49 = vadd.f32 %v635_v41, %v290_v48  ;;  %v462_v57 = vadd.f32 %v638_v56, %v461_v55 }
 0x141   :  { %v297_v52 = vmax.f32 %v291_v49, 0.0  ;;  %466 = vst [vmem:[#allocation15] sm:$0xff] %v462_v57 }
 0x146   :  { %v292_v50 = vpop.f32.mrf.mxu1  ;;  %v463_v58 = vpop.f32.mrf.mxu3 }
 0x147   :  { %v293_v51 = vadd.f32 %v635_v41, %v292_v50  ;;  %v464_v59 = vadd.f32 %v638_v56, %v463_v58 }
 0x149   :  { %v298_v53 = vmax.f32 %v293_v51, 0.0  ;;  %467 = vst [vmem:[#allocation15 + $0x8] sm:$0xff] %v464_v59 }
 0x14a   :  { %493 = dma.vmem_to_hbm [thread:$0]  %s486_s25, 256, %s488_s27, [#allocation16], %s877_s28, %s877_s28, %s878_s29  }
 0x14b   :  { %v300_v54 = vpack.c.bf16 %v298_v53, %v297_v52 }
 0x14d   :  { %577 = vmatmul.msk.bf16.gmra.mxu2 %vm269_vm1, %v300_v54 }
 0x1c0   :  { %v368_v61 = vpop.f32.mrf.mxu2 }
 0x1c1   :  { %v369_v62 = vadd.f32 %v637_v60, %v368_v61 }
 0x1c3   :  { %378 = vst [vmem:[#allocation14] sm:$0xff] %v369_v62 }
 0x1c8   :  { %v370_v63 = vpop.f32.mrf.mxu2 }
 0x1c9   :  { %v371_v0 = vadd.f32 %v637_v60, %v370_v63 }
 0x1cb   :  { %379 = vst [vmem:[#allocation14 + $0x8] sm:$0xff] %v371_v0 }
 0x1d0   :  { %v373_v1 = vpop.f32.mrf.mxu2 }
 0x1d1   :  { %v374_v2 = vadd.f32 %v637_v60, %v373_v1 }
 0x1d3   :  { %380 = vst [vmem:[#allocation14 + $0x10] sm:$0xff] %v374_v2 }
 0x1d8   :  { %v375_v3 = vpop.f32.mrf.mxu2 }
 0x1d9   :  { %v376_v4 = vadd.f32 %v637_v60, %v375_v3 }
 0x1db   :  { %381 = vst [vmem:[#allocation14 + $0x18] sm:$0xff] %v376_v4 }
 0x1dc   :  { %480 = dma.vmem_to_hbm [thread:$0]  %s473_s13, 512, %s475_s18, [#allocation4], %s877_s28, %s877_s28, %s878_s29  }
 0x1dd   :  { %863 = dma.done.wait [#allocation4], 512  }
 0x1de   :  { %864 = vsyncadd [#allocation4], 4294966784 }
 0x1df   :  { %865 = dma.done.wait [#allocation16], 256  }
 0x1e0   :  { %866 = vsyncadd [#allocation16], 4294967040 }
 0x1e1   :  { %502 = vsyncpa [#allocation3], 1 }
 0x1e2   :  { %503 = vsyncpa [#allocation6], 1 }
 0x1e3   :  { %504 = vsyncpa [#allocation9], 1 }
 0x1e4   :  { %505 = vsyncpa [#allocation12], 1 }
 0x1e5   :  { %506 = vsyncpa [#allocation4], 1 }
 0x1e6   :  { %507 = vsyncpa [#allocation16], 1 }

</bundles_post_ra>
